<compile_context>
chip_gen: v7x
topology: tpu7x:2x2x1
jax: 0.10.0
libtpu: 0.0.40
codegen_flags: <defaults>
</compile_context>

<pallas_src>
import functools

import jax
import jax.numpy as jnp
from jax import lax
from jax.experimental import pallas as pl
from jax.experimental.pallas import tpu as pltpu

SCALE = 20.0        # ComparisonCoSENTLoss(scale=20.0)
EPS_SQ = 1e-24      # (1e-12)^2 -> matches F.normalize's max(norm, 1e-12)
_NUM_SPLITS = 2     # leading "parallel" grid axis (2 TensorCores on v7x)


def _cosent_kernel(emb_ref, out_ref, m_ref, s_ref, *,
                   scale, dim, total_rows, block_rows, blocks_per_split):
    c = pl.program_id(0)      # core-split index (parallel)
    i = pl.program_id(1)      # block within this split (arbitrary / reduction)

    # Per-split accumulator init.  m is floored at 0.0 (never -inf) so an
    # all-masked split stays finite (s stays 0) and exp(m_prev - m_new) <= 1.
    @pl.when(i == 0)
    def _init():
        m_ref[...] = jnp.zeros_like(m_ref)
        s_ref[...] = jnp.zeros_like(s_ref)

    # Static ref slices are zero-cost views; each load/cast covers only one
    # (TB, D) slab.  Process the close pair, drop it, then the far pair to
    # keep at most ~3 f32 slabs live at once.
    c1 = emb_ref[:, 0 * dim:1 * dim].astype(jnp.float32)
    c2 = emb_ref[:, 1 * dim:2 * dim].astype(jnp.float32)
    dot_c = jnp.sum(c1 * c2, axis=1, keepdims=True)
    n_c1 = jnp.sum(c1 * c1, axis=1, keepdims=True)
    n_c2 = jnp.sum(c2 * c2, axis=1, keepdims=True)
    sim_c = dot_c * lax.rsqrt(jnp.maximum(n_c1, EPS_SQ)) \
                  * lax.rsqrt(jnp.maximum(n_c2, EPS_SQ))

    f1 = emb_ref[:, 2 * dim:3 * dim].astype(jnp.float32)
    f2 = emb_ref[:, 3 * dim:4 * dim].astype(jnp.float32)
    dot_f = jnp.sum(f1 * f2, axis=1, keepdims=True)
    n_f1 = jnp.sum(f1 * f1, axis=1, keepdims=True)
    n_f2 = jnp.sum(f2 * f2, axis=1, keepdims=True)
    sim_f = dot_f * lax.rsqrt(jnp.maximum(n_f1, EPS_SQ)) \
                  * lax.rsqrt(jnp.maximum(n_f2, EPS_SQ))

    diff = (sim_f - sim_c) * scale                   # (TB, 1)

    # Mask rows of partial / fully-out-of-range tiles BEFORE the exp.
    row = ((c * blocks_per_split + i) * block_rows
           + lax.broadcasted_iota(jnp.int32, diff.shape, 0))
    diff = jnp.where(row < total_rows, diff, -jnp.inf)

    # Online logsumexp update (all (1,1)-shaped vector ops).
    m_prev = m_ref[...]
    s_prev = s_ref[...]
    tile_max = jnp.max(diff, axis=0, keepdims=True)
    m_new = jnp.maximum(m_prev, tile_max)            # finite, >= 0
    tile_sum = jnp.sum(jnp.exp(diff - m_new), axis=0, keepdims=True)
    s_new = s_prev * jnp.exp(m_prev - m_new) + tile_sum
    m_ref[...] = m_new
    s_ref[...] = s_new

    # Write this split's partial (m, s) once, into a lane-dense (8,128) block:
    # column 0 carries m, column 1 carries s.
    @pl.when(i == pl.num_programs(1) - 1)
    def _finalize():
        col = lax.broadcasted_iota(jnp.int32, out_ref.shape, 1)
        out_ref[...] = jnp.where(col == 0, m_new,
                                 jnp.where(col == 1, s_new, 0.0))


def _generation_params():
    """Pick block-size target and scoped-VMEM limit from the TPU generation."""
    vmem_bytes = None
    get_info = getattr(pltpu, "get_tpu_info", None)
    if get_info is not None:
        try:
            info = get_info()
            for name in ("vmem_capacity_bytes", "vmem_size_bytes", "vmem_bytes"):
                v = getattr(info, name, None)
                if isinstance(v, int) and v > 0:
                    vmem_bytes = v
                    break
        except Exception:
            vmem_bytes = None
    if vmem_bytes is None:
        vmem_bytes = 64 * 1024 * 1024            # conservative (v7x-class)
    if vmem_bytes < 100 * 1024 * 1024:           # v7x-class: 64 MiB per TC
        return {"block_target": 12 << 20, "vmem_limit": 48 << 20}
    return {"block_target": 16 << 20, "vmem_limit": 96 << 20}   # v5e / v6e


def _choose_block_rows(batch, row_bytes, target_bytes):
    """Batch-tile size: ~target_bytes per block, sublane-aligned (mult of 8)."""
    tb = max(8, min(batch, target_bytes // max(row_bytes, 1)))
    if tb >= batch:
        return batch                     # single block == full batch dim
    return max(8, (tb // 8) * 8)


def comparison_cosent_loss(embeddings: jax.Array, *,
                           scale: float = SCALE,
                           block_rows: int | None = None) -> jax.Array:
    """embeddings: (batch, 4, dim) [close1, close2, far1, far2] -> scalar loss."""
    b, four, d = embeddings.shape
    assert four == 4

    # Lane-alignment guard: pad D to a multiple of 128 so each in-block slice
    # offset k*D is vreg-aligned.  Zero padding changes no dot / norm.
    d_pad = ((d + 127) // 128) * 128
    if d_pad != d:
        embeddings = jnp.pad(embeddings, ((0, 0), (0, 0), (0, d_pad - d)))
    x = embeddings.reshape(b, 4 * d_pad)  # contiguous minor-dim merge: free

    itemsize = x.dtype.itemsize
    params = _generation_params()
    if block_rows is None:
        block_rows = _choose_block_rows(b, 4 * d_pad * itemsize,
                                        params["block_target"])
    n_blocks = pl.cdiv(b, block_rows)
    blocks_per_split = pl.cdiv(n_blocks, _NUM_SPLITS)
    grid = (_NUM_SPLITS, blocks_per_split)

    def in_map(c, i, _n_last=n_blocks - 1, _bpc=blocks_per_split):
        # Clamp blocks that fall entirely past the batch (they are fully
        # masked inside the kernel) so the DMA stays in range.
        return (jnp.minimum(c * _bpc + i, _n_last), 0)

    kernel = functools.partial(
        _cosent_kernel, scale=scale, dim=d_pad, total_rows=b,
        block_rows=block_rows, blocks_per_split=blocks_per_split)

    out = pl.pallas_call(
        kernel,
        out_shape=jax.ShapeDtypeStruct((_NUM_SPLITS * 8, 128), jnp.float32),
        grid_spec=pltpu.PrefetchScalarGridSpec(
            num_scalar_prefetch=0,
            grid=grid,
            in_specs=[pl.BlockSpec((block_rows, 4 * d_pad), in_map)],
            out_specs=pl.BlockSpec((8, 128), lambda c, i: (c, 0)),
            scratch_shapes=[pltpu.VMEM((1, 1), jnp.float32),   # running max
                            pltpu.VMEM((1, 1), jnp.float32)],  # running sum
        ),
        compiler_params=pltpu.CompilerParams(
            dimension_semantics=("parallel", "arbitrary"),
            vmem_limit_bytes=params["vmem_limit"]),
        cost_estimate=pl.CostEstimate(
            flops=12 * b * d_pad,
            transcendentals=5 * b,
            bytes_accessed=b * 4 * d_pad * itemsize + _NUM_SPLITS * 8 * 128 * 4),
    )(x)

    # Combine the per-split partials with the implicit 0 logit.
    ms = out[::8, 0]                                  # (num_splits,)
    ss = out[::8, 1]
    m = jnp.maximum(jnp.max(ms), 0.0)
    total = jnp.sum(ss * jnp.exp(ms - m)) + jnp.exp(-m)
    return m + jnp.log(total)


def _reference(embeddings: jax.Array, scale: float = SCALE) -> jax.Array:
    e = embeddings.astype(jnp.float32)
    n = jnp.sqrt(jnp.sum(e * e, axis=2, keepdims=True))
    e = e / jnp.maximum(n, 1e-12)
    sim_close = jnp.sum(e[:, 0] * e[:, 1], axis=1) * scale
    sim_far = jnp.sum(e[:, 2] * e[:, 3], axis=1) * scale
    diff = sim_far - sim_close
    diff0 = jnp.concatenate([jnp.zeros((1,), jnp.float32), diff])
    return jax.scipy.special.logsumexp(diff0)


if __name__ == "__main__":
    key = jax.random.PRNGKey(0)

    # Small shape consistent with the module: (batch=2, 4, dim=32).
    emb = jax.random.normal(key, (2, 4, 32), dtype=jnp.float32)
    loss = comparison_cosent_loss(emb)
    jax.block_until_ready(loss)
    ref = _reference(emb)
    assert jnp.allclose(loss, ref, atol=1e-3, rtol=1e-3), (loss, ref)

    # Exercise batch tiling + partial-tile masking + the 2-way core split:
    # B=20 with TB=8 -> 3 real blocks, split into 2x2 grid blocks (the 4th is
    # clamped + fully masked), last real tile has 4 masked rows.
    emb2 = jax.random.normal(jax.random.PRNGKey(0), (20, 4, 128),
                             dtype=jnp.float32)
    loss2 = comparison_cosent_loss(emb2, block_rows=8)
    jax.block_until_ready(loss2)
    ref2 = _reference(emb2)
    assert jnp.allclose(loss2, ref2, atol=1e-3, rtol=1e-3), (loss2, ref2)

    print("KERNEL_OK")
</pallas_src>

<mosaic_0001>
module attributes {stable_mosaic.version = 11 : i64} {
  func.func @_cosent_kernel(%arg0: i32, %arg1: i32, %arg2: memref<2x512xf32, #tpu.memory_space<vmem>>, %arg3: memref<8x128xf32, #tpu.memory_space<vmem>>, %arg4: memref<1x1xf32, #tpu.memory_space<vmem>>, %arg5: memref<1x1xf32, #tpu.memory_space<vmem>>) attributes {dimension_semantics = [#tpu.dimension_semantics<parallel>, #tpu.dimension_semantics<arbitrary>], iteration_bounds = array<i64: 2, 1>, scalar_prefetch = 0 : i64, scratch_operands = 2 : i64, tpu.core_type = #tpu.core_type<tc>, window_params = [{transform_indices = @transform_0, window_bounds = array<i64: 2, 512>}, {transform_indices = @transform_1, window_bounds = array<i64: 8, 128>}]} {
    %c0_i32 = arith.constant 0 : i32
    %0 = arith.cmpi eq, %arg1, %c0_i32 : i32
    %1 = arith.extui %0 : i1 to i32
    %c0_i32_0 = arith.constant 0 : i32
    %2 = arith.cmpi ne, %1, %c0_i32_0 : i32
    scf.if %2 {
      %cst_29 = arith.constant 0.000000e+00 : f32
      %73 = vector.broadcast %cst_29 : f32 to vector<1x1xf32>
      %c0_30 = arith.constant 0 : index
      %c0_31 = arith.constant 0 : index
      %74 = vector.load %arg4[%c0_30, %c0_31] : memref<1x1xf32, #tpu.memory_space<vmem>>, vector<1x1xf32>
      tpu.vector_store %arg4[%c0_30, %c0_31], %73 {strides = array<i32>} : memref<1x1xf32, #tpu.memory_space<vmem>>, vector<1x1xf32>,
      %cst_32 = arith.constant 0.000000e+00 : f32
      %75 = vector.broadcast %cst_32 : f32 to vector<1x1xf32>
      %c0_33 = arith.constant 0 : index
      %c0_34 = arith.constant 0 : index
      %76 = vector.load %arg5[%c0_33, %c0_34] : memref<1x1xf32, #tpu.memory_space<vmem>>, vector<1x1xf32>
      tpu.vector_store %arg5[%c0_33, %c0_34], %75 {strides = array<i32>} : memref<1x1xf32, #tpu.memory_space<vmem>>, vector<1x1xf32>,
    } else {
    }
    %c0 = arith.constant 0 : index
    %c0_1 = arith.constant 0 : index
    %3 = vector.load %arg2[%c0, %c0_1] : memref<2x512xf32, #tpu.memory_space<vmem>>, vector<2x128xf32>
    %c0_2 = arith.constant 0 : index
    %c128 = arith.constant 128 : index
    %4 = vector.load %arg2[%c0_2, %c128] : memref<2x512xf32, #tpu.memory_space<vmem>>, vector<2x128xf32>
    %5 = arith.mulf %3, %4 : vector<2x128xf32>
    %cst = arith.constant dense<0.000000e+00> : vector<2xf32>
    %6 = vector.multi_reduction <add>, %5, %cst [1] : vector<2x128xf32> to vector<2xf32>
    %7 = vector.shape_cast %6 : vector<2xf32> to vector<2x1xf32>
    %8 = arith.mulf %3, %3 : vector<2x128xf32>
    %cst_3 = arith.constant dense<0.000000e+00> : vector<2xf32>
    %9 = vector.multi_reduction <add>, %8, %cst_3 [1] : vector<2x128xf32> to vector<2xf32>
    %10 = vector.shape_cast %9 : vector<2xf32> to vector<2x1xf32>
    %11 = arith.mulf %4, %4 : vector<2x128xf32>
    %cst_4 = arith.constant dense<0.000000e+00> : vector<2xf32>
    %12 = vector.multi_reduction <add>, %11, %cst_4 [1] : vector<2x128xf32> to vector<2xf32>
    %13 = vector.shape_cast %12 : vector<2xf32> to vector<2x1xf32>
    %cst_5 = arith.constant 1.000000e-24 : f32
    %14 = vector.broadcast %cst_5 : f32 to vector<2x1xf32>
    %15 = arith.maximumf %10, %14 : vector<2x1xf32>
    %16 = math.rsqrt %15 : vector<2x1xf32>
    %17 = arith.mulf %7, %16 : vector<2x1xf32>
    %cst_6 = arith.constant 1.000000e-24 : f32
    %18 = vector.broadcast %cst_6 : f32 to vector<2x1xf32>
    %19 = arith.maximumf %13, %18 : vector<2x1xf32>
    %20 = math.rsqrt %19 : vector<2x1xf32>
    %21 = arith.mulf %17, %20 : vector<2x1xf32>
    %c0_7 = arith.constant 0 : index
    %c256 = arith.constant 256 : index
    %22 = vector.load %arg2[%c0_7, %c256] : memref<2x512xf32, #tpu.memory_space<vmem>>, vector<2x128xf32>
    %c0_8 = arith.constant 0 : index
    %c384 = arith.constant 384 : index
    %23 = vector.load %arg2[%c0_8, %c384] : memref<2x512xf32, #tpu.memory_space<vmem>>, vector<2x128xf32>
    %24 = arith.mulf %22, %23 : vector<2x128xf32>
    %cst_9 = arith.constant dense<0.000000e+00> : vector<2xf32>
    %25 = vector.multi_reduction <add>, %24, %cst_9 [1] : vector<2x128xf32> to vector<2xf32>
    %26 = vector.shape_cast %25 : vector<2xf32> to vector<2x1xf32>
    %27 = arith.mulf %22, %22 : vector<2x128xf32>
    %cst_10 = arith.constant dense<0.000000e+00> : vector<2xf32>
    %28 = vector.multi_reduction <add>, %27, %cst_10 [1] : vector<2x128xf32> to vector<2xf32>
    %29 = vector.shape_cast %28 : vector<2xf32> to vector<2x1xf32>
    %30 = arith.mulf %23, %23 : vector<2x128xf32>
    %cst_11 = arith.constant dense<0.000000e+00> : vector<2xf32>
    %31 = vector.multi_reduction <add>, %30, %cst_11 [1] : vector<2x128xf32> to vector<2xf32>
    %32 = vector.shape_cast %31 : vector<2xf32> to vector<2x1xf32>
    %cst_12 = arith.constant 1.000000e-24 : f32
    %33 = vector.broadcast %cst_12 : f32 to vector<2x1xf32>
    %34 = arith.maximumf %29, %33 : vector<2x1xf32>
    %35 = math.rsqrt %34 : vector<2x1xf32>
    %36 = arith.mulf %26, %35 : vector<2x1xf32>
    %cst_13 = arith.constant 1.000000e-24 : f32
    %37 = vector.broadcast %cst_13 : f32 to vector<2x1xf32>
    %38 = arith.maximumf %32, %37 : vector<2x1xf32>
    %39 = math.rsqrt %38 : vector<2x1xf32>
    %40 = arith.mulf %36, %39 : vector<2x1xf32>
    %41 = arith.subf %40, %21 : vector<2x1xf32>
    %cst_14 = arith.constant 2.000000e+01 : f32
    %42 = vector.broadcast %cst_14 : f32 to vector<2x1xf32>
    %43 = arith.mulf %41, %42 : vector<2x1xf32>
    %c1_i32 = arith.constant 1 : i32
    %44 = arith.muli %arg0, %c1_i32 : i32
    %45 = arith.addi %44, %arg1 : i32
    %c2_i32 = arith.constant 2 : i32
    %46 = arith.muli %45, %c2_i32 : i32
    %47 = tpu.iota {dimensions = array<i32: 0>} : vector<2x1xi32>
    %48 = vector.broadcast %46 : i32 to vector<2x1xi32>
    %49 = arith.addi %48, %47 : vector<2x1xi32>
    %c2_i32_15 = arith.constant 2 : i32
    %50 = vector.broadcast %c2_i32_15 : i32 to vector<2x1xi32>
    %51 = arith.cmpi slt, %49, %50 : vector<2x1xi32>
    %cst_16 = arith.constant 0xFF800000 : f32
    %52 = vector.broadcast %cst_16 : f32 to vector<2x1xf32>
    %53 = arith.select %51, %43, %52 : vector<2x1xi1>, vector<2x1xf32>
    %c0_17 = arith.constant 0 : index
    %c0_18 = arith.constant 0 : index
    %54 = vector.load %arg4[%c0_17, %c0_18] : memref<1x1xf32, #tpu.memory_space<vmem>>, vector<1x1xf32>
    %c0_19 = arith.constant 0 : index
    %c0_20 = arith.constant 0 : index
    %55 = vector.load %arg5[%c0_19, %c0_20] : memref<1x1xf32, #tpu.memory_space<vmem>>, vector<1x1xf32>
    %cst_21 = arith.constant dense<0xFF800000> : vector<1xf32>
    %56 = vector.multi_reduction <maximumf>, %53, %cst_21 [0] : vector<2x1xf32> to vector<1xf32>
    %57 = vector.shape_cast %56 : vector<1xf32> to vector<1x1xf32>
    %58 = arith.maximumf %54, %57 : vector<1x1xf32>
    %59 = vector.broadcast %58 : vector<1x1xf32> to vector<2x1xf32>
    %60 = arith.subf %53, %59 : vector<2x1xf32>
    %61 = math.exp %60 : vector<2x1xf32>
    %cst_22 = arith.constant dense<0.000000e+00> : vector<1xf32>
    %62 = vector.multi_reduction <add>, %61, %cst_22 [0] : vector<2x1xf32> to vector<1xf32>
    %63 = vector.shape_cast %62 : vector<1xf32> to vector<1x1xf32>
    %64 = arith.subf %54, %58 : vector<1x1xf32>
    %65 = math.exp %64 : vector<1x1xf32>
    %66 = arith.mulf %55, %65 : vector<1x1xf32>
    %67 = arith.addf %66, %63 : vector<1x1xf32>
    %c0_23 = arith.constant 0 : index
    %c0_24 = arith.constant 0 : index
    %68 = vector.load %arg4[%c0_23, %c0_24] : memref<1x1xf32, #tpu.memory_space<vmem>>, vector<1x1xf32>
    tpu.vector_store %arg4[%c0_23, %c0_24], %58 {strides = array<i32>} : memref<1x1xf32, #tpu.memory_space<vmem>>, vector<1x1xf32>,
    %c0_25 = arith.constant 0 : index
    %c0_26 = arith.constant 0 : index
    %69 = vector.load %arg5[%c0_25, %c0_26] : memref<1x1xf32, #tpu.memory_space<vmem>>, vector<1x1xf32>
    tpu.vector_store %arg5[%c0_25, %c0_26], %67 {strides = array<i32>} : memref<1x1xf32, #tpu.memory_space<vmem>>, vector<1x1xf32>,
    %c0_i32_27 = arith.constant 0 : i32
    %70 = arith.cmpi eq, %arg1, %c0_i32_27 : i32
    %71 = arith.extui %70 : i1 to i32
    %c0_i32_28 = arith.constant 0 : i32
    %72 = arith.cmpi ne, %71, %c0_i32_28 : i32
    scf.if %72 {
      %73 = tpu.iota {dimensions = array<i32: 1>} : vector<8x128xi32>
      %c0_i32_29 = arith.constant 0 : i32
      %74 = vector.broadcast %c0_i32_29 : i32 to vector<8x128xi32>
      %75 = arith.cmpi eq, %73, %74 : vector<8x128xi32>
      %c1_i32_30 = arith.constant 1 : i32
      %76 = vector.broadcast %c1_i32_30 : i32 to vector<8x128xi32>
      %77 = arith.cmpi eq, %73, %76 : vector<8x128xi32>
      %cst_31 = arith.constant 0.000000e+00 : f32
      %78 = vector.shape_cast %67 : vector<1x1xf32> to vector<1x1xf32>
      %79 = vector.broadcast %78 : vector<1x1xf32> to vector<8x128xf32>
      %80 = vector.broadcast %cst_31 : f32 to vector<8x128xf32>
      %81 = arith.select %77, %79, %80 : vector<8x128xi1>, vector<8x128xf32>
      %82 = vector.shape_cast %58 : vector<1x1xf32> to vector<1x1xf32>
      %83 = vector.broadcast %82 : vector<1x1xf32> to vector<8x128xf32>
      %84 = arith.select %75, %83, %81 : vector<8x128xi1>, vector<8x128xf32>
      %c0_32 = arith.constant 0 : index
      %c0_33 = arith.constant 0 : index
      %85 = vector.load %arg3[%c0_32, %c0_33] : memref<8x128xf32, #tpu.memory_space<vmem>>, vector<8x128xf32>
      tpu.vector_store %arg3[%c0_32, %c0_33], %84 {strides = array<i32>} : memref<8x128xf32, #tpu.memory_space<vmem>>, vector<8x128xf32>,
    } else {
    }
    return
  }
  func.func @transform_0(%arg0: i32, %arg1: i32) -> (i32, i32) {
    %c1_i32 = arith.constant 1 : i32
    %0 = arith.muli %arg0, %c1_i32 : i32
    %1 = arith.addi %0, %arg1 : i32
    %c0_i32 = arith.constant 0 : i32
    %2 = arith.minsi %1, %c0_i32 : i32
    %c0_i32_0 = arith.constant 0 : i32
    %c0_i32_1 = arith.constant 0 : i32
    return %2, %c0_i32_0 : i32, i32
  }
  func.func @transform_1(%arg0: i32, %arg1: i32) -> (i32, i32) {
    %c0_i32 = arith.constant 0 : i32
    %c0_i32_0 = arith.constant 0 : i32
    return %arg0, %c0_i32 : i32, i32
  }
}

</mosaic_0001>

<bundles_post_ra>
// kernel: tpu_custom_call.1
= control target key start
LH: loop header
LB: loop body
LE: loop exit
PB: predicated region body
PF: predicated region fallthrough
CT: control target
= control target key end

     0   :  { %6 = vsyncpa [#allocation5], 0  ;;  %s809_s0 = inlined_call_operand.hbm [shape: f32[2,512], index: 0, kind: input, shape index: {}]   ;;  %s810_s1 = inlined_call_operand.hbm [shape: f32[16,128], index: 1, kind: output, shape index: {}]  }
   0x1   :  { %8 = vsyncpa [#allocation5 + $0x1], 0 }
   0x2   :  { %9 = vsyncpa [#allocation6], 0 }
   0x3   :  { %11 = vsyncpa [#allocation6 + $0x1], 0  ;;  %s632_s6 = smov 0   ;;  %s634_s7 = smov 0  }
   0x4   :  { %s636_s8 = smov 0   ;;  %s638_s9 = smov 0  }
   0x5   :  { %s640_s10 = smov 0   ;;  %s642_s11 = smov 0  }
   0x6   :  { %s644_s12 = smov 0   ;;  %s646_s13 = smov 0  }
   0x7 LB: > { %s365_s14 = sadd.s32 4294967295, %s616_s13   ;;  %s366_s15 = sadd.s32 4294967294, %s616_s13   ;;  %s616_s13 = sphi %s646_s13, %s17_s13   ;;  %s612_s12 = sphi %s644_s12, %s831_s12   ;;  %s608_s11 = sphi %s642_s11, %s830_s11   ;;  %s604_s10 = sphi %s640_s10, %s799_s10   ;;  %s600_s9 = sphi %s638_s9, %s829_s9   ;;  %s596_s8 = sphi %s636_s8, %s828_s8   ;;  %s592_s7 = sphi %s634_s7, %s827_s7   ;;  %s588_s6 = sphi %s632_s6, %s826_s6  }
   0x8   : > { %s29_s16 = sadd.s32 1, %s612_s12  ;;  %p585_p1 = scmp.ne.s32.totalorder %s604_s10, 0 }
   0x9   : > { %p31_p0 = scmp.ge.s32.totalorder %s29_s16, 2  ;;  %p50_p2 = scmp.eq.s32.totalorder %s616_s13, 0 }
   0xa   : > { %p55_p3 = scmp.ne.s32.totalorder %s604_s10, %s600_s9  ;;  %p56_p5 = scmp.eq.s32.totalorder %s365_s14, 0 }
   0xb   : > { %s833_s16 = smov (%p31_p0, %s29_s16), 0  ;;  %p678_p4 = por %p585_p1, %p50_p2 }
   0xc   : > { %p682_p6 = por %p56_p5, %p55_p3  ;;  %s65_s19 = ssub.s32 %s612_s12, %s833_s16 }
   0xd   : > { %p66_p7 = scmp.eq.s32.totalorder %s65_s19, 0  ;;  %s68_s20 = sadd.s32 1, %s596_s8 }
   0xe   : > { %s815_s18 = scalar_select %p682_p6, 1, 0 }
   0xf   : > { %s690_s21 = scalar_select %p66_p7, %s596_s8, %s68_s20  }
  0x10   : > { %p78_p8 = scmp.ne.s32.totalorder %s596_s8, %s592_s7  ;;  %p79_p9 = scmp.eq.s32.totalorder %s365_s14, 1 }
  0x11   : > { %p84_p10 = scmp.ne.s32.totalorder %s592_s7, %s588_s6  ;;  %p85_p11 = scmp.eq.s32.totalorder %s366_s15, 1 }
  0x12   : > { %p696_p12 = por %p79_p9, %p78_p8  ;;  %p393_p1 = scmp.lt.s32.totalorder %s616_s13, 2 }
  0x13   : > { %p701_p0 = por %p85_p11, %p84_p10  ;;  %s618_s24 = smov [#allocation4]  }
  0x14   : > { %s816_s22 = scalar_select %p696_p12, 1, 0 }
  0x15   : > { %s817_s23 = scalar_select %p701_p0, 1, 0 }
  0x16   : > { %s120_s25 = sshll.u32 %s618_s24, 4  ;;  %p708_p2 = pnand %p393_p1, %p678_p4  ;;  %s121_s25 = int_to_ptr.vmem [resolvable:$true] %s120_s25 }
  0x17   : > { %s483_s29 = scalar_lea.hbm %s809_s0, 128 }
  0x18   : > { %s818_s26 = scalar_select %p708_p2, 1, 0 }
  0x19   : > { %p484_p7 = scmp.ne.s32.totalorder %s809_s0, %s483_s29  ;;  %p485_p8 = pneg %p708_p2 }
  0x1a   : > { %p490_p4 = scmp.lt.u32.totalorder %s483_s29, %s483_s29  ;;  %p492_p11 = scmp.lt.u32.totalorder %s483_s29, %s809_s0 }
  0x1b   : > { %p486_p9 = pnand %p485_p8, %p484_p7 }
  0x1c   : > { %p493_p1 = por %p492_p11, %p490_p4 }
  0x1d   : > { %p487_p10 = pneg %p486_p9 }
  0x1f   : > { %p494_p13 = pnand %p493_p1, %p487_p10 }
  0x21   : > { %497 = shalt.err (!%p494_p13)
}
  0x22   : > { %s498_s5 = scalar_lea.vmem %s121_s25, 128  ;;  %s505_s9 = scalar_lea.vmem %s121_s25, 256 }
  0x23   : > { %p499_p3 = scmp.ne.s32.totalorder %s121_s25, %s498_s5  ;;  %p506_p12 = scmp.lt.s32.totalorder %s121_s25, %s121_s25 }
  0x24   : > { %p507_p6 = scmp.lt.s32.totalorder %s505_s9, %s498_s5 }
  0x25   : > { %p501_p5 = pnand %p499_p3, %p485_p8 }
  0x26   : > { %p508_p2 = por %p507_p6, %p506_p12 }
  0x27   : > { %p502_p0 = pneg %p501_p5 }
  0x29   : > { %p509_p7 = pnand %p508_p2, %p502_p0 }
  0x2b   : > { %512 = shalt.err (!%p509_p7)
}
  0x2c   : > { %p819_p9 = scmp.ne.s32.totalorder %s818_s26, 0  ;;  %p820_p10 = scmp.lt.s32.totalorder %s616_s13, 3 }
  0x2d   : > { %p821_p13 = scmp.ge.s32.totalorder %s616_s13, 1 }
  0x2e   : > { %388 = dma.hbm_to_vmem [thread:$0]  (!%p819_p9), %s809_s0, 128, %s121_s25, [#allocation5]  }
  0x2f   : > { %p126_p4 = pnand %p821_p13, %p820_p10 }
  0x30   : > { %s131_s17 = sand.u32 (!%p126_p4), 1, %s604_s10   ;;  %p822_p6 = scmp.ne.s32.totalorder (!%p126_p4), %s815_s18, 0 }
  0x31   : > { %129 = sbr.rel (%p126_p4) target bundleno = 422 (0x1a6), region = 24  ;;  %s373_s19 = sshll.u32 (!%p126_p4), %s131_s17, 3 }
  0x32   : > { %s132_s20 = scalar_lea.sflag (!%p126_p4), [#allocation5], %s131_s17  ;;  %s135_s24 = scalar_lea.vmem (!%p126_p4), [#allocation4], %s373_s19 }
  0x38   : > { %578 = dma.done.wait (%p822_p6), %s132_s20, 128  }
  0x39   : > { %580 = vsyncadd (%p822_p6), %s132_s20, 4294967168  ;;  %vm167_vm0 = vcmask 1041408   ;;  %v164_v0 = vld [vmem:[%s135_s24] sm:$0x3]  ;;  %v165_v1 = vld [vmem:[%s135_s24 + $0x2] sm:$0x3]  ;;  %v209_v26 = vlaneseq }
  0x3a   : > { %v185_v2 = vld [vmem:[%s135_s24 + $0x4] sm:$0x3]  ;;  %v171_v3 = vmul.f32 %v164_v0, %v164_v0  ;;  %v175_v4 = vmul.f32 %v165_v1, %v165_v1  ;;  %v186_v6 = vld [vmem:[%s135_s24 + $0x6] sm:$0x3]  ;;  %v166_v12 = vmul.f32 %v165_v1, %v164_v0  ;;  %vm161_vm1 = vcmask 0   ;;  %s375_s18 = sshll.u32 %s608_s11, 1 }
  0x3b   : > { %v191_v5 = vmul.f32 %v185_v2, %v185_v2  ;;  %v195_v7 = vmul.f32 %v186_v6, %v186_v6  ;;  %v187_v13 = vmul.f32 %v186_v6, %v185_v2  ;;  %v619_v16 = vmov 0   ;;  %s151_s25 = sand.u32 1, %s592_s7   ;;  %s377_s27 = sshll.u32 %s608_s11, 7 }
  0x3c   : > { %v172_v8 = vsel %vm167_vm0, %v171_v3, 0.0  ;;  %v176_v9 = vsel %vm167_vm0, %v175_v4, 0.0  ;;  %v168_v14 = vsel %vm167_vm0, %v166_v12, 0.0  ;;  %470 = vset.pattern.permute.xlu1 %v619_v16  ;;  %v620_v17 = vmov 0.0   ;;  %469 = vset.pattern.permute.xlu0 %v619_v16  ;;  %s374_s26 = sshll.u32 %s151_s25, 3  ;;  %s756_s3 = scalar_lea.hbm %s810_s1, %s377_s27 }
  0x3d   : > { %173 = vadd.xlane.f32.xlu0 %v172_v8  ;;  %177 = vadd.xlane.f32.xlu1 %v176_v9  ;;  %v192_v10 = vsel %vm167_vm0, %v191_v5, 0.0  ;;  %v196_v11 = vsel %vm167_vm0, %v195_v7, 0.0  ;;  %v188_v15 = vsel %vm167_vm0, %v187_v13, 0.0  ;;  %162 = vst.msk [vmem:[#allocation2] sm:$0x1] %vm161_vm1, %v620_v17  ;;  %v210_v30 = vshrl.u32 %v209_v26, 7 }
  0x3e   : > { %163 = vst.msk [vmem:[#allocation3] sm:$0x1] %vm161_vm1, %v620_v17  ;;  %v211_v33 = vstv %s375_s18  ;;  %vm234_vm3 = vcmask 1024   ;;  %v254_v7 = vand.u32 127, %v209_v26  ;;  %s153_s28 = scalar_lea.vmem [#allocation7], %s374_s26  ;;  %s274_s4 = scalar_lea.sflag [#allocation6], %s151_s25 }
  0x3f   : > { %v212_v37 = vadd.s32 %v211_v33, %v210_v30  ;;  %v228_v51 = vsub.s32 0, %v210_v30  ;;  %s287_s29 = sshll.u32 %s153_s28, 4  ;;  %p823_p0 = scmp.ne.s32.totalorder %s816_s22, 0  ;;  %s758_s29 = int_to_ptr.vmem [resolvable:$true] %s287_s29 }
  0x40   : > { %vm256_vm4 = vcmp.eq.s32.totalorder %v254_v7, 1  ;;  %vm255_vm5 = vcmp.eq.s32.totalorder %v254_v7, 0  ;;  %s513_s11 = scalar_lea.vmem %s758_s29, 128  ;;  %s621_s5 = smov [#allocation7]  }
  0x41   : > { %193 = vadd.xlane.f32.xlu0 %v192_v10  ;;  %197 = vadd.xlane.f32.xlu1 %v196_v11  ;;  %vm213_vm2 = vcmp.lt.s32.totalorder %v212_v37, 2  ;;  %p514_p12 = scmp.ne.s32.totalorder %s758_s29, %s513_s11  ;;  %s517_s9 = sshll.u32 %s621_s5, 4  ;;  %s518_s9 = int_to_ptr.vmem [resolvable:$false] %s517_s9 }
  0x42   : > { %s519_s14 = scalar_lea.vmem %s518_s9, 256  ;;  %p520_p5 = scmp.lt.s32.totalorder %s758_s29, %s518_s9 }
  0x43   : > { %p515_p2 = pnand %p514_p12, %p823_p0  ;;  %p521_p8 = scmp.lt.s32.totalorder %s519_s14, %s513_s11 }
  0x44   : > { %v215_v49 = vld [vmem:[#allocation2] sm:$0x1] }
  0x45   : > { %169 = vadd.xlane.f32.xlu0 %v168_v14  ;;  %189 = vadd.xlane.f32.xlu1 %v188_v15  ;;  %v216_v1 = vld [vmem:[#allocation3] sm:$0x1]  ;;  %p516_p3 = pneg %p515_p2  ;;  %p522_p11 = por %p521_p8, %p520_p5 }
  0x47   : > { %p523_p1 = pnand %p522_p11, %p516_p3 }
  0xca   : > { %v174_v18 = vpop.xlane.xlu0 %173  ;;  %v178_v19 = vpop.xlane.xlu1 %177 }
  0xcb   : > { %v179_v20 = vmax.f32 %v174_v18, 1e-24  ;;  %v182_v21 = vmax.f32 %v178_v19, 1e-24 }
  0xcd   : > { %471 = vrsqrt.f32 %v179_v20 }
  0xce   : > { %v194_v22 = vpop.xlane.xlu0 %193  ;;  %v198_v23 = vpop.xlane.xlu1 %197  ;;  %473 = vrsqrt.f32 %v182_v21 }
  0xcf   : > { %v199_v24 = vmax.f32 %v194_v22, 1e-24  ;;  %v202_v25 = vmax.f32 %v198_v23, 1e-24 }
  0xd1   : > { %475 = vrsqrt.f32 %v199_v24 }
  0xd2   : > { %477 = vrsqrt.f32 %v202_v25  ;;  %v170_v28 = vpop.xlane.xlu0 %169  ;;  %v190_v29 = vpop.xlane.xlu1 %189 }
  0xd7   : > { %v472_v27 = vpop.eup %471 }
  0xd8   : > { %v474_v31 = vpop.eup %473  ;;  %v181_v32 = vmul.f32 %v472_v27, %v170_v28 }
  0xda   : > { %v184_v38 = vmul.f32 %v474_v31, %v181_v32 }
  0xdb   : > { %v476_v34 = vpop.eup %475 }
  0xdc   : > { %v478_v35 = vpop.eup %477  ;;  %v201_v36 = vmul.f32 %v476_v34, %v190_v29 }
  0xde   : > { %v204_v39 = vmul.f32 %v478_v35, %v201_v36 }
  0xe0   : > { %v205_v40 = vsub.f32 %v204_v39, %v184_v38 }
  0xe2   : > { %v206_v41 = vmul.f32 20.0, %v205_v40 }
  0xe4   : > { %v214_v42 = vsel %vm213_vm2, %v206_v41, -inf }
  0xe5   : > { %v217_v43 = vsel %vm167_vm0, %v214_v42, -inf }
  0xe6   : > { %v218_v44 = vrot.slane %v217_v43, 4 }
  0xe8   : > { %v219_v45 = vmax.f32 %v217_v43, %v218_v44 }
  0xea   : > { %v220_v46 = vrot.slane %v219_v45, 2 }
  0xec   : > { %v221_v47 = vmax.f32 %v219_v45, %v220_v46 }
  0xee   : > { %v222_v48 = vrot.slane %v221_v47, 1 }
  0xf0   : > { %v223_v50 = vmax.f32 %v221_v47, %v222_v48 }
  0xf2   : > { %v224_v52 = vmax.f32 %v215_v49, %v223_v50 }
  0xf4   : > { %v229_v53 = vrot.slane %v224_v52, %v228_v51  ;;  %248 = vst.msk [vmem:[#allocation2] sm:$0x1] %vm161_vm1, %v224_v52  ;;  %v242_v56 = vsub.f32 %v215_v49, %v224_v52 }
  0xf6   : > { %268 = vperm.xlu1 %470, %v229_v53   ;;  %v231_v54 = vsub.f32 %v214_v42, %v229_v53  ;;  %v243_v57 = vmul.f32 1.442695, %v242_v56 }
  0xf8   : > { %v232_v55 = vmul.f32 1.442695, %v231_v54 }
  0xfa   : > { %479 = vpow2.f32 %v232_v55 }
  0xfb   : > { %481 = vpow2.f32 %v243_v57 }
 0x104   : > { %v480_v58 = vpop.eup %479 }
 0x105   : > { %v235_v59 = vsel %vm234_vm3, %v480_v58, 0.0  ;;  %v482_v0 = vpop.eup %481 }
 0x106   : > { %v236_v60 = vrot.slane %v235_v59, 4  ;;  %v245_v4 = vmul.f32 %v482_v0, %v216_v1 }
 0x108   : > { %v237_v61 = vadd.f32 %v236_v60, %v235_v59 }
 0x10a   : > { %v238_v62 = vrot.slane %v237_v61, 2 }
 0x10c   : > { %v239_v63 = vadd.f32 %v238_v62, %v237_v61 }
 0x10e   : > { %v240_v2 = vrot.slane %v239_v63, 1 }
 0x110   : > { %v241_v3 = vadd.f32 %v240_v2, %v239_v63 }
 0x112   : > { %v246_v5 = vadd.f32 %v245_v4, %v241_v3 }
 0x114   : > { %v261_v6 = vrot.slane %v246_v5, %v228_v51  ;;  %249 = vst.msk [vmem:[#allocation3] sm:$0x1] %vm161_vm1, %v246_v5 }
 0x116   : > { %263 = vperm.xlu0 %469, %v261_v6  }
 0x175   : > { %v269_v9 = vpop.permute.xlu1 %268 }
 0x195   : > { %v264_v8 = vpop.permute.xlu0 %263 }
 0x196   : > { %v266_v10 = vsel %vm256_vm4, %v264_v8, 0.0 }
 0x197   : > { %v271_v11 = vsel %vm255_vm5, %v269_v9, %v266_v10 }
 0x198   : > { %272 = vst [vmem:[%s153_s28] sm:$0xff] %v271_v11 }
 0x199   : > { %526 = shalt.err (!%p523_p1)
}
 0x19a   : > { %s527_s15 = scalar_lea.hbm %s756_s3, 128  ;;  %s531_s20 = scalar_lea.hbm %s810_s1, 256 }
 0x19b   : > { %p528_p7 = scmp.ne.s32.totalorder %s756_s3, %s527_s15  ;;  %p532_p13 = scmp.lt.u32.totalorder %s756_s3, %s810_s1 }
 0x19c   : > { %p533_p4 = scmp.lt.u32.totalorder %s531_s20, %s527_s15  ;;  %p535_p12 = scmp.lt.u32.totalorder %s527_s15, %s756_s3 }
 0x19d   : > { %p529_p9 = pnand %p528_p7, %p823_p0 }
 0x19e   : > { %p534_p6 = por %p533_p4, %p532_p13 }
 0x19f   : > { %p530_p10 = pneg %p529_p9 }
 0x1a0   : > { %p536_p2 = por %p535_p12, %p534_p6 }
 0x1a2   : > { %p537_p3 = pnand %p536_p2, %p530_p10 }
 0x1a4   : > { %540 = shalt.err (!%p537_p3)
}
 0x1a5   : > { %383 = dma.vmem_to_hbm [thread:$0]  (%p823_p0), %s758_s29, 128, %s756_s3, %s274_s4  }
 0x1a6 PF: > { %s299_s25 = sand.u32 1, %s588_s6   ;;  %p824_p5 = scmp.ne.s32.totalorder %s817_s23, 0 }
 0x1a7   : > { %p825_p8 = scmp.ge.s32.totalorder %s616_s13, 2  ;;  %s300_s26 = scalar_lea.sflag [#allocation6], %s299_s25 }
 0x1a9   : > { %p390_p11 = pnand %p825_p8, %p824_p5 }
 0x1ab   : > { %582 = dma.done.wait (!%p390_p11), %s300_s26, 128  }
 0x1ac   : > { %584 = vsyncadd (!%p390_p11), %s300_s26, 4294967168  ;;  %s17_s13 = sadd.s32 1, %s616_s13   ;;  %s826_s6 = smov %s592_s7 }
 0x1ad   : > { %p14_p1 = scmp.ge.s32.totalorder %s17_s13, 4   ;;  %s827_s7 = smov %s596_s8 }
 0x1ae   : > { %s828_s8 = smov %s690_s21  ;;  %s829_s9 = smov %s604_s10 }
 0x1af   : > { %s799_s10 = smov 0   ;;  %s830_s11 = smov %s612_s12 }
 0x1b0   : > { %s831_s12 = smov %s833_s16  ;;  %16 = sbr.rel (!%p14_p1) target bundleno = 7 (0x7), region = 77 }
 0x1b7   :  { %305 = vsyncpa [#allocation5], 1 }
 0x1b8   :  { %307 = vsyncpa [#allocation5 + $0x1], 1 }
 0x1b9   :  { %308 = vsyncpa [#allocation6], 1 }
 0x1ba   :  { %310 = vsyncpa [#allocation6 + $0x1], 1 }

</bundles_post_ra>
